<compile_context>
chip_gen: v6e
topology: v6e:2x2x1
jax: 0.10.0
libtpu: 0.0.40
codegen_flags: <defaults>
</compile_context>

<pallas_src>
import functools

import jax
import jax.numpy as jnp
from jax.experimental import pallas as pl
from jax.experimental.pallas import tpu as pltpu


def _decoder_lstm_kernel(x_ref, h0_ref, c0_ref,
                         wih0_ref, wih_ref, whh_ref, b_ref,
                         y_ref, hn_ref, cn_ref, *, n_layers, hidden_size):
    """Single-step stacked LSTM.

    x_ref   : (TB, W+H)        concat(emb_t, h_t_1_tilde), lane-dense
    h0_ref  : (L, TB, H)       previous hidden states
    c0_ref  : (L, TB, H)       previous cell states
    wih0_ref: (W+H, 4H)        layer-0 input weights, pre-transposed
    wih_ref : (L-1, H, 4H)     layers 1..L-1 input weights, pre-transposed
    whh_ref : (L, H, 4H)       recurrent weights, pre-transposed
    b_ref   : (L, 1, 4H)       fused bias (b_ih + b_hh)
    y_ref   : (TB, H)          top-layer output (lane-dense)
    hn_ref  : (L, TB, H)       new hidden states
    cn_ref  : (L, TB, H)       new cell states
    """
    H = hidden_size
    inp = x_ref[...].astype(jnp.float32)                    # (TB, W+H)

    for layer in range(n_layers):
        h_prev = h0_ref[layer].astype(jnp.float32)          # (TB, H)
        c_prev = c0_ref[layer].astype(jnp.float32)          # (TB, H)

        w_in = wih0_ref[...] if layer == 0 else wih_ref[layer - 1]

        # gates = x @ W_ih^T + h @ W_hh^T + (b_ih + b_hh)   -> (TB, 4H)
        gates = jnp.dot(inp, w_in, preferred_element_type=jnp.float32)
        gates = gates + jnp.dot(h_prev, whh_ref[layer],
                                preferred_element_type=jnp.float32)
        gates = gates + b_ref[layer]                         # (1, 4H) broadcast

        # PyTorch gate ordering: i, f, g, o
        i = jax.nn.sigmoid(gates[:, 0 * H:1 * H])
        f = jax.nn.sigmoid(gates[:, 1 * H:2 * H])
        g = jnp.tanh(gates[:, 2 * H:3 * H])
        o = jax.nn.sigmoid(gates[:, 3 * H:4 * H])

        c_new = f * c_prev + i * g
        h_new = o * jnp.tanh(c_new)

        hn_ref[layer] = h_new.astype(hn_ref.dtype)
        cn_ref[layer] = c_new.astype(cn_ref.dtype)

        # TODO(synk): nn.LSTM applies dropout between layers in TRAINING mode
        # only; this kernel implements the inference forward (no dropout).
        inp = h_new

    y_ref[...] = inp.astype(y_ref.dtype)                     # top-layer output


def decoder_forward(emb_t, h_t_1_tilde, h_t_1, params):
    """Decoder.forward.

    emb_t      : (B, 1, W)
    h_t_1_tilde: (B, 1, H) or None
    h_t_1      : (h_0, c_0), each (L, B, H)
    params     : list of L dicts with PyTorch-layout LSTM weights:
                 'w_ih' (4H, in_dim), 'w_hh' (4H, H), 'b_ih' (4H,), 'b_hh' (4H,)
    Returns (y (B, 1, H), (h_n, c_n)) — same as the PyTorch module.
    """
    h0, c0 = h_t_1
    L, B, H = h0.shape
    W = emb_t.shape[-1]
    D_in = W + H

    if h_t_1_tilde is None:
        h_t_1_tilde = jnp.zeros((B, 1, H), dtype=emb_t.dtype)

    # concat along features, drop the singleton time dim -> lane-dense (B, W+H)
    x = jnp.concatenate([emb_t[:, 0, :], h_t_1_tilde[:, 0, :]], axis=-1)

    # Pre-transpose weights once in the wrapper (no in-kernel .T) + fuse biases.
    wih0_T = params[0]['w_ih'].T                                        # (W+H, 4H)
    wih_rest_T = jnp.stack([params[l]['w_ih'].T for l in range(1, L)])  # (L-1, H, 4H)
    whh_T = jnp.stack([params[l]['w_hh'].T for l in range(L)])          # (L, H, 4H)
    bias = jnp.stack([(params[l]['b_ih'] + params[l]['b_hh'])[None, :]
                      for l in range(L)])                               # (L, 1, 4H)

    TB = B                                  # whole batch per grid step (small B)
    grid = (pl.cdiv(B, TB),)

    kernel = functools.partial(_decoder_lstm_kernel, n_layers=L, hidden_size=H)

    y, h_n, c_n = pl.pallas_call(
        kernel,
        out_shape=(
            jax.ShapeDtypeStruct((B, H), emb_t.dtype),
            jax.ShapeDtypeStruct((L, B, H), h0.dtype),
            jax.ShapeDtypeStruct((L, B, H), c0.dtype),
        ),
        grid_spec=pltpu.PrefetchScalarGridSpec(
            num_scalar_prefetch=0,
            grid=grid,
            in_specs=[
                pl.BlockSpec((TB, D_in), lambda b: (b, 0)),            # x
                pl.BlockSpec((L, TB, H), lambda b: (0, b, 0)),         # h0
                pl.BlockSpec((L, TB, H), lambda b: (0, b, 0)),         # c0
                pl.BlockSpec((D_in, 4 * H), lambda b: (0, 0)),         # wih0_T (shared)
                pl.BlockSpec((L - 1, H, 4 * H), lambda b: (0, 0, 0)),  # wih_rest_T
                pl.BlockSpec((L, H, 4 * H), lambda b: (0, 0, 0)),      # whh_T
                pl.BlockSpec((L, 1, 4 * H), lambda b: (0, 0, 0)),      # fused bias
            ],
            out_specs=(
                pl.BlockSpec((TB, H), lambda b: (b, 0)),               # y (lane-dense)
                pl.BlockSpec((L, TB, H), lambda b: (0, b, 0)),         # h_n
                pl.BlockSpec((L, TB, H), lambda b: (0, b, 0)),         # c_n
            ),
        ),
        compiler_params=pltpu.CompilerParams(
            dimension_semantics=("parallel",)),
    )(x, h0, c0, wih0_T, wih_rest_T, whh_T, bias)

    return y[:, None, :], (h_n, c_n)


def decoder_reference(emb_t, h_t_1_tilde, h_t_1, params):
    """Pure-JAX reference mirroring the PyTorch forward (inference)."""
    h0, c0 = h_t_1
    L, B, H = h0.shape
    if h_t_1_tilde is None:
        h_t_1_tilde = jnp.zeros((B, 1, H), dtype=emb_t.dtype)
    inp = jnp.concatenate([emb_t, h_t_1_tilde], axis=-1)[:, 0, :]      # (B, W+H)
    h_list, c_list = [], []
    for l in range(L):
        p = params[l]
        gates = inp @ p['w_ih'].T + p['b_ih'] + h0[l] @ p['w_hh'].T + p['b_hh']
        i, f, g, o = jnp.split(gates, 4, axis=-1)
        i, f, o = jax.nn.sigmoid(i), jax.nn.sigmoid(f), jax.nn.sigmoid(o)
        g = jnp.tanh(g)
        c_new = f * c0[l] + i * g
        h_new = o * jnp.tanh(c_new)
        h_list.append(h_new)
        c_list.append(c_new)
        inp = h_new
    return inp[:, None, :], (jnp.stack(h_list), jnp.stack(c_list))


if __name__ == "__main__":
    B, W, H, L = 2, 16, 32, 4                 # batch, word_vec_dim, hidden, layers
    key = jax.random.PRNGKey(0)
    keys = jax.random.split(key, 4 + 4 * L)

    emb_t = jax.random.normal(keys[0], (B, 1, W), dtype=jnp.float32)
    h_t_1_tilde = jax.random.normal(keys[1], (B, 1, H), dtype=jnp.float32)
    h0 = jax.random.normal(keys[2], (L, B, H), dtype=jnp.float32)
    c0 = jax.random.normal(keys[3], (L, B, H), dtype=jnp.float32)

    params = []
    kk = 4
    for l in range(L):
        in_dim = (W + H) if l == 0 else H
        w_ih = jax.random.normal(keys[kk], (4 * H, in_dim), jnp.float32) / jnp.sqrt(in_dim); kk += 1
        w_hh = jax.random.normal(keys[kk], (4 * H, H), jnp.float32) / jnp.sqrt(H); kk += 1
        b_ih = jax.random.normal(keys[kk], (4 * H,), jnp.float32) * 0.1; kk += 1
        b_hh = jax.random.normal(keys[kk], (4 * H,), jnp.float32) * 0.1; kk += 1
        params.append(dict(w_ih=w_ih, w_hh=w_hh, b_ih=b_ih, b_hh=b_hh))

    # --- case 1: h_t_1_tilde provided ---
    y, (h_n, c_n) = decoder_forward(emb_t, h_t_1_tilde, (h0, c0), params)
    y = jax.block_until_ready(y)
    y_ref, (h_ref, c_ref) = decoder_reference(emb_t, h_t_1_tilde, (h0, c0), params)

    assert y.shape == (B, 1, H)
    assert h_n.shape == (L, B, H) and c_n.shape == (L, B, H)
    assert jnp.allclose(y, y_ref, atol=1e-5, rtol=1e-5), "y mismatch vs reference"
    assert jnp.allclose(h_n, h_ref, atol=1e-5, rtol=1e-5), "h_n mismatch vs reference"
    assert jnp.allclose(c_n, c_ref, atol=1e-5, rtol=1e-5), "c_n mismatch vs reference"

    # --- case 2: h_t_1_tilde is None (first decoding step) ---
    y2, (h2, c2) = decoder_forward(emb_t, None, (h0, c0), params)
    y2 = jax.block_until_ready(y2)
    y2_ref, (h2_ref, c2_ref) = decoder_reference(emb_t, None, (h0, c0), params)
    assert jnp.allclose(y2, y2_ref, atol=1e-5, rtol=1e-5)
    assert jnp.allclose(h2, h2_ref, atol=1e-5, rtol=1e-5)
    assert jnp.allclose(c2, c2_ref, atol=1e-5, rtol=1e-5)

    print("KERNEL_OK")
</pallas_src>

<mosaic_0001>
module attributes {stable_mosaic.version = 11 : i64} {
  func.func @_decoder_lstm_kernel(%arg0: i32, %arg1: memref<2x48xf32, #tpu.memory_space<vmem>>, %arg2: memref<4x2x32xf32, #tpu.memory_space<vmem>>, %arg3: memref<4x2x32xf32, #tpu.memory_space<vmem>>, %arg4: memref<48x128xf32, #tpu.memory_space<vmem>>, %arg5: memref<3x32x128xf32, #tpu.memory_space<vmem>>, %arg6: memref<4x32x128xf32, #tpu.memory_space<vmem>>, %arg7: memref<4x1x128xf32, #tpu.memory_space<vmem>>, %arg8: memref<2x32xf32, #tpu.memory_space<vmem>>, %arg9: memref<4x2x32xf32, #tpu.memory_space<vmem>>, %arg10: memref<4x2x32xf32, #tpu.memory_space<vmem>>) attributes {dimension_semantics = [#tpu.dimension_semantics<parallel>], iteration_bounds = array<i64: 1>, scalar_prefetch = 0 : i64, scratch_operands = 0 : i64, tpu.core_type = #tpu.core_type<tc>, window_params = [{transform_indices = @transform_0, window_bounds = array<i64: 2, 48>}, {transform_indices = @transform_1, window_bounds = array<i64: 4, 2, 32>}, {transform_indices = @transform_2, window_bounds = array<i64: 4, 2, 32>}, {pipeline_mode = #tpu.pipeline_mode<synchronous>, transform_indices = @transform_3, window_bounds = array<i64: 48, 128>}, {pipeline_mode = #tpu.pipeline_mode<synchronous>, transform_indices = @transform_4, window_bounds = array<i64: 3, 32, 128>}, {pipeline_mode = #tpu.pipeline_mode<synchronous>, transform_indices = @transform_5, window_bounds = array<i64: 4, 32, 128>}, {pipeline_mode = #tpu.pipeline_mode<synchronous>, transform_indices = @transform_6, window_bounds = array<i64: 4, 1, 128>}, {transform_indices = @transform_7, window_bounds = array<i64: 2, 32>}, {transform_indices = @transform_8, window_bounds = array<i64: 4, 2, 32>}, {transform_indices = @transform_9, window_bounds = array<i64: 4, 2, 32>}]} {
    %c0 = arith.constant 0 : index
    %c0_0 = arith.constant 0 : index
    %0 = vector.load %arg1[%c0, %c0_0] : memref<2x48xf32, #tpu.memory_space<vmem>>, vector<2x48xf32>
    %c0_1 = arith.constant 0 : index
    %c0_2 = arith.constant 0 : index
    %c0_3 = arith.constant 0 : index
    %1 = vector.load %arg2[%c0_1, %c0_2, %c0_3] : memref<4x2x32xf32, #tpu.memory_space<vmem>>, vector<1x2x32xf32>
    %2 = vector.shape_cast %1 : vector<1x2x32xf32> to vector<2x32xf32>
    %c0_4 = arith.constant 0 : index
    %c0_5 = arith.constant 0 : index
    %c0_6 = arith.constant 0 : index
    %3 = vector.load %arg3[%c0_4, %c0_5, %c0_6] : memref<4x2x32xf32, #tpu.memory_space<vmem>>, vector<1x2x32xf32>
    %4 = vector.shape_cast %3 : vector<1x2x32xf32> to vector<2x32xf32>
    %c0_7 = arith.constant 0 : index
    %c0_8 = arith.constant 0 : index
    %5 = vector.load %arg4[%c0_7, %c0_8] : memref<48x128xf32, #tpu.memory_space<vmem>>, vector<48x128xf32>
    %cst = arith.constant dense<0.000000e+00> : vector<2x128xf32>
    %6 = tpu.matmul %0, %5, %cst {dimension_numbers = #tpu.dot_dimension_numbers<[1], [0], [0], [1], [0, 0, 1, 1], [], []>} : vector<2x48xf32>, vector<48x128xf32>, vector<2x128xf32> -> vector<2x128xf32>
    %c0_9 = arith.constant 0 : index
    %c0_10 = arith.constant 0 : index
    %c0_11 = arith.constant 0 : index
    %7 = vector.load %arg6[%c0_9, %c0_10, %c0_11] : memref<4x32x128xf32, #tpu.memory_space<vmem>>, vector<1x32x128xf32>
    %8 = vector.shape_cast %7 : vector<1x32x128xf32> to vector<32x128xf32>
    %cst_12 = arith.constant dense<0.000000e+00> : vector<2x128xf32>
    %9 = tpu.matmul %2, %8, %cst_12 {dimension_numbers = #tpu.dot_dimension_numbers<[1], [0], [0], [1], [0, 0, 1, 1], [], []>} : vector<2x32xf32>, vector<32x128xf32>, vector<2x128xf32> -> vector<2x128xf32>
    %10 = arith.addf %6, %9 : vector<2x128xf32>
    %c0_13 = arith.constant 0 : index
    %c0_14 = arith.constant 0 : index
    %c0_15 = arith.constant 0 : index
    %11 = vector.load %arg7[%c0_13, %c0_14, %c0_15] : memref<4x1x128xf32, #tpu.memory_space<vmem>>, vector<1x1x128xf32>
    %12 = vector.shape_cast %11 : vector<1x1x128xf32> to vector<1x128xf32>
    %13 = vector.broadcast %12 : vector<1x128xf32> to vector<2x128xf32>
    %14 = arith.addf %10, %13 : vector<2x128xf32>
    %15 = vector.extract_strided_slice %14 {offsets = [0, 0], sizes = [2, 32], strides = [1, 1]} : vector<2x128xf32> to vector<2x32xf32>
    %16 = arith.negf %15 : vector<2x32xf32>
    %17 = math.exp %16 : vector<2x32xf32>
    %cst_16 = arith.constant 1.000000e+00 : f32
    %18 = vector.broadcast %cst_16 : f32 to vector<2x32xf32>
    %19 = arith.addf %18, %17 : vector<2x32xf32>
    %20 = arith.divf %18, %19 : vector<2x32xf32>
    %21 = vector.extract_strided_slice %14 {offsets = [0, 32], sizes = [2, 32], strides = [1, 1]} : vector<2x128xf32> to vector<2x32xf32>
    %22 = arith.negf %21 : vector<2x32xf32>
    %23 = math.exp %22 : vector<2x32xf32>
    %cst_17 = arith.constant 1.000000e+00 : f32
    %24 = vector.broadcast %cst_17 : f32 to vector<2x32xf32>
    %25 = arith.addf %24, %23 : vector<2x32xf32>
    %26 = arith.divf %24, %25 : vector<2x32xf32>
    %27 = vector.extract_strided_slice %14 {offsets = [0, 64], sizes = [2, 32], strides = [1, 1]} : vector<2x128xf32> to vector<2x32xf32>
    %28 = math.tanh %27 : vector<2x32xf32>
    %29 = vector.extract_strided_slice %14 {offsets = [0, 96], sizes = [2, 32], strides = [1, 1]} : vector<2x128xf32> to vector<2x32xf32>
    %30 = arith.negf %29 : vector<2x32xf32>
    %31 = math.exp %30 : vector<2x32xf32>
    %cst_18 = arith.constant 1.000000e+00 : f32
    %32 = vector.broadcast %cst_18 : f32 to vector<2x32xf32>
    %33 = arith.addf %32, %31 : vector<2x32xf32>
    %34 = arith.divf %32, %33 : vector<2x32xf32>
    %35 = arith.mulf %26, %4 : vector<2x32xf32>
    %36 = arith.mulf %20, %28 : vector<2x32xf32>
    %37 = arith.addf %35, %36 : vector<2x32xf32>
    %38 = math.tanh %37 : vector<2x32xf32>
    %39 = arith.mulf %34, %38 : vector<2x32xf32>
    %c0_19 = arith.constant 0 : index
    %c0_20 = arith.constant 0 : index
    %c0_21 = arith.constant 0 : index
    %40 = vector.load %arg9[%c0_19, %c0_20, %c0_21] : memref<4x2x32xf32, #tpu.memory_space<vmem>>, vector<1x2x32xf32>
    %41 = vector.shape_cast %40 : vector<1x2x32xf32> to vector<2x32xf32>
    %42 = vector.shape_cast %39 : vector<2x32xf32> to vector<1x2x32xf32>
    tpu.vector_store %arg9[%c0_19, %c0_20, %c0_21], %42 {strides = array<i32>} : memref<4x2x32xf32, #tpu.memory_space<vmem>>, vector<1x2x32xf32>,
    %c0_22 = arith.constant 0 : index
    %c0_23 = arith.constant 0 : index
    %c0_24 = arith.constant 0 : index
    %43 = vector.load %arg10[%c0_22, %c0_23, %c0_24] : memref<4x2x32xf32, #tpu.memory_space<vmem>>, vector<1x2x32xf32>
    %44 = vector.shape_cast %43 : vector<1x2x32xf32> to vector<2x32xf32>
    %45 = vector.shape_cast %37 : vector<2x32xf32> to vector<1x2x32xf32>
    tpu.vector_store %arg10[%c0_22, %c0_23, %c0_24], %45 {strides = array<i32>} : memref<4x2x32xf32, #tpu.memory_space<vmem>>, vector<1x2x32xf32>,
    %c1 = arith.constant 1 : index
    %c0_25 = arith.constant 0 : index
    %c0_26 = arith.constant 0 : index
    %46 = vector.load %arg2[%c1, %c0_25, %c0_26] : memref<4x2x32xf32, #tpu.memory_space<vmem>>, vector<1x2x32xf32>
    %47 = vector.shape_cast %46 : vector<1x2x32xf32> to vector<2x32xf32>
    %c1_27 = arith.constant 1 : index
    %c0_28 = arith.constant 0 : index
    %c0_29 = arith.constant 0 : index
    %48 = vector.load %arg3[%c1_27, %c0_28, %c0_29] : memref<4x2x32xf32, #tpu.memory_space<vmem>>, vector<1x2x32xf32>
    %49 = vector.shape_cast %48 : vector<1x2x32xf32> to vector<2x32xf32>
    %c0_30 = arith.constant 0 : index
    %c0_31 = arith.constant 0 : index
    %c0_32 = arith.constant 0 : index
    %50 = vector.load %arg5[%c0_30, %c0_31, %c0_32] : memref<3x32x128xf32, #tpu.memory_space<vmem>>, vector<1x32x128xf32>
    %51 = vector.shape_cast %50 : vector<1x32x128xf32> to vector<32x128xf32>
    %cst_33 = arith.constant dense<0.000000e+00> : vector<2x128xf32>
    %52 = tpu.matmul %39, %51, %cst_33 {dimension_numbers = #tpu.dot_dimension_numbers<[1], [0], [0], [1], [0, 0, 1, 1], [], []>} : vector<2x32xf32>, vector<32x128xf32>, vector<2x128xf32> -> vector<2x128xf32>
    %c1_34 = arith.constant 1 : index
    %c0_35 = arith.constant 0 : index
    %c0_36 = arith.constant 0 : index
    %53 = vector.load %arg6[%c1_34, %c0_35, %c0_36] : memref<4x32x128xf32, #tpu.memory_space<vmem>>, vector<1x32x128xf32>
    %54 = vector.shape_cast %53 : vector<1x32x128xf32> to vector<32x128xf32>
    %cst_37 = arith.constant dense<0.000000e+00> : vector<2x128xf32>
    %55 = tpu.matmul %47, %54, %cst_37 {dimension_numbers = #tpu.dot_dimension_numbers<[1], [0], [0], [1], [0, 0, 1, 1], [], []>} : vector<2x32xf32>, vector<32x128xf32>, vector<2x128xf32> -> vector<2x128xf32>
    %56 = arith.addf %52, %55 : vector<2x128xf32>
    %c1_38 = arith.constant 1 : index
    %c0_39 = arith.constant 0 : index
    %c0_40 = arith.constant 0 : index
    %57 = vector.load %arg7[%c1_38, %c0_39, %c0_40] : memref<4x1x128xf32, #tpu.memory_space<vmem>>, vector<1x1x128xf32>
    %58 = vector.shape_cast %57 : vector<1x1x128xf32> to vector<1x128xf32>
    %59 = vector.broadcast %58 : vector<1x128xf32> to vector<2x128xf32>
    %60 = arith.addf %56, %59 : vector<2x128xf32>
    %61 = vector.extract_strided_slice %60 {offsets = [0, 0], sizes = [2, 32], strides = [1, 1]} : vector<2x128xf32> to vector<2x32xf32>
    %62 = arith.negf %61 : vector<2x32xf32>
    %63 = math.exp %62 : vector<2x32xf32>
    %cst_41 = arith.constant 1.000000e+00 : f32
    %64 = vector.broadcast %cst_41 : f32 to vector<2x32xf32>
    %65 = arith.addf %64, %63 : vector<2x32xf32>
    %66 = arith.divf %64, %65 : vector<2x32xf32>
    %67 = vector.extract_strided_slice %60 {offsets = [0, 32], sizes = [2, 32], strides = [1, 1]} : vector<2x128xf32> to vector<2x32xf32>
    %68 = arith.negf %67 : vector<2x32xf32>
    %69 = math.exp %68 : vector<2x32xf32>
    %cst_42 = arith.constant 1.000000e+00 : f32
    %70 = vector.broadcast %cst_42 : f32 to vector<2x32xf32>
    %71 = arith.addf %70, %69 : vector<2x32xf32>
    %72 = arith.divf %70, %71 : vector<2x32xf32>
    %73 = vector.extract_strided_slice %60 {offsets = [0, 64], sizes = [2, 32], strides = [1, 1]} : vector<2x128xf32> to vector<2x32xf32>
    %74 = math.tanh %73 : vector<2x32xf32>
    %75 = vector.extract_strided_slice %60 {offsets = [0, 96], sizes = [2, 32], strides = [1, 1]} : vector<2x128xf32> to vector<2x32xf32>
    %76 = arith.negf %75 : vector<2x32xf32>
    %77 = math.exp %76 : vector<2x32xf32>
    %cst_43 = arith.constant 1.000000e+00 : f32
    %78 = vector.broadcast %cst_43 : f32 to vector<2x32xf32>
    %79 = arith.addf %78, %77 : vector<2x32xf32>
    %80 = arith.divf %78, %79 : vector<2x32xf32>
    %81 = arith.mulf %72, %49 : vector<2x32xf32>
    %82 = arith.mulf %66, %74 : vector<2x32xf32>
    %83 = arith.addf %81, %82 : vector<2x32xf32>
    %84 = math.tanh %83 : vector<2x32xf32>
    %85 = arith.mulf %80, %84 : vector<2x32xf32>
    %c1_44 = arith.constant 1 : index
    %c0_45 = arith.constant 0 : index
    %c0_46 = arith.constant 0 : index
    %86 = vector.load %arg9[%c1_44, %c0_45, %c0_46] : memref<4x2x32xf32, #tpu.memory_space<vmem>>, vector<1x2x32xf32>
    %87 = vector.shape_cast %86 : vector<1x2x32xf32> to vector<2x32xf32>
    %88 = vector.shape_cast %85 : vector<2x32xf32> to vector<1x2x32xf32>
    tpu.vector_store %arg9[%c1_44, %c0_45, %c0_46], %88 {strides = array<i32>} : memref<4x2x32xf32, #tpu.memory_space<vmem>>, vector<1x2x32xf32>,
    %c1_47 = arith.constant 1 : index
    %c0_48 = arith.constant 0 : index
    %c0_49 = arith.constant 0 : index
    %89 = vector.load %arg10[%c1_47, %c0_48, %c0_49] : memref<4x2x32xf32, #tpu.memory_space<vmem>>, vector<1x2x32xf32>
    %90 = vector.shape_cast %89 : vector<1x2x32xf32> to vector<2x32xf32>
    %91 = vector.shape_cast %83 : vector<2x32xf32> to vector<1x2x32xf32>
    tpu.vector_store %arg10[%c1_47, %c0_48, %c0_49], %91 {strides = array<i32>} : memref<4x2x32xf32, #tpu.memory_space<vmem>>, vector<1x2x32xf32>,
    %c2 = arith.constant 2 : index
    %c0_50 = arith.constant 0 : index
    %c0_51 = arith.constant 0 : index
    %92 = vector.load %arg2[%c2, %c0_50, %c0_51] : memref<4x2x32xf32, #tpu.memory_space<vmem>>, vector<1x2x32xf32>
    %93 = vector.shape_cast %92 : vector<1x2x32xf32> to vector<2x32xf32>
    %c2_52 = arith.constant 2 : index
    %c0_53 = arith.constant 0 : index
    %c0_54 = arith.constant 0 : index
    %94 = vector.load %arg3[%c2_52, %c0_53, %c0_54] : memref<4x2x32xf32, #tpu.memory_space<vmem>>, vector<1x2x32xf32>
    %95 = vector.shape_cast %94 : vector<1x2x32xf32> to vector<2x32xf32>
    %c1_55 = arith.constant 1 : index
    %c0_56 = arith.constant 0 : index
    %c0_57 = arith.constant 0 : index
    %96 = vector.load %arg5[%c1_55, %c0_56, %c0_57] : memref<3x32x128xf32, #tpu.memory_space<vmem>>, vector<1x32x128xf32>
    %97 = vector.shape_cast %96 : vector<1x32x128xf32> to vector<32x128xf32>
    %cst_58 = arith.constant dense<0.000000e+00> : vector<2x128xf32>
    %98 = tpu.matmul %85, %97, %cst_58 {dimension_numbers = #tpu.dot_dimension_numbers<[1], [0], [0], [1], [0, 0, 1, 1], [], []>} : vector<2x32xf32>, vector<32x128xf32>, vector<2x128xf32> -> vector<2x128xf32>
    %c2_59 = arith.constant 2 : index
    %c0_60 = arith.constant 0 : index
    %c0_61 = arith.constant 0 : index
    %99 = vector.load %arg6[%c2_59, %c0_60, %c0_61] : memref<4x32x128xf32, #tpu.memory_space<vmem>>, vector<1x32x128xf32>
    %100 = vector.shape_cast %99 : vector<1x32x128xf32> to vector<32x128xf32>
    %cst_62 = arith.constant dense<0.000000e+00> : vector<2x128xf32>
    %101 = tpu.matmul %93, %100, %cst_62 {dimension_numbers = #tpu.dot_dimension_numbers<[1], [0], [0], [1], [0, 0, 1, 1], [], []>} : vector<2x32xf32>, vector<32x128xf32>, vector<2x128xf32> -> vector<2x128xf32>
    %102 = arith.addf %98, %101 : vector<2x128xf32>
    %c2_63 = arith.constant 2 : index
    %c0_64 = arith.constant 0 : index
    %c0_65 = arith.constant 0 : index
    %103 = vector.load %arg7[%c2_63, %c0_64, %c0_65] : memref<4x1x128xf32, #tpu.memory_space<vmem>>, vector<1x1x128xf32>
    %104 = vector.shape_cast %103 : vector<1x1x128xf32> to vector<1x128xf32>
    %105 = vector.broadcast %104 : vector<1x128xf32> to vector<2x128xf32>
    %106 = arith.addf %102, %105 : vector<2x128xf32>
    %107 = vector.extract_strided_slice %106 {offsets = [0, 0], sizes = [2, 32], strides = [1, 1]} : vector<2x128xf32> to vector<2x32xf32>
    %108 = arith.negf %107 : vector<2x32xf32>
    %109 = math.exp %108 : vector<2x32xf32>
    %cst_66 = arith.constant 1.000000e+00 : f32
    %110 = vector.broadcast %cst_66 : f32 to vector<2x32xf32>
    %111 = arith.addf %110, %109 : vector<2x32xf32>
    %112 = arith.divf %110, %111 : vector<2x32xf32>
    %113 = vector.extract_strided_slice %106 {offsets = [0, 32], sizes = [2, 32], strides = [1, 1]} : vector<2x128xf32> to vector<2x32xf32>
    %114 = arith.negf %113 : vector<2x32xf32>
    %115 = math.exp %114 : vector<2x32xf32>
    %cst_67 = arith.constant 1.000000e+00 : f32
    %116 = vector.broadcast %cst_67 : f32 to vector<2x32xf32>
    %117 = arith.addf %116, %115 : vector<2x32xf32>
    %118 = arith.divf %116, %117 : vector<2x32xf32>
    %119 = vector.extract_strided_slice %106 {offsets = [0, 64], sizes = [2, 32], strides = [1, 1]} : vector<2x128xf32> to vector<2x32xf32>
    %120 = math.tanh %119 : vector<2x32xf32>
    %121 = vector.extract_strided_slice %106 {offsets = [0, 96], sizes = [2, 32], strides = [1, 1]} : vector<2x128xf32> to vector<2x32xf32>
    %122 = arith.negf %121 : vector<2x32xf32>
    %123 = math.exp %122 : vector<2x32xf32>
    %cst_68 = arith.constant 1.000000e+00 : f32
    %124 = vector.broadcast %cst_68 : f32 to vector<2x32xf32>
    %125 = arith.addf %124, %123 : vector<2x32xf32>
    %126 = arith.divf %124, %125 : vector<2x32xf32>
    %127 = arith.mulf %118, %95 : vector<2x32xf32>
    %128 = arith.mulf %112, %120 : vector<2x32xf32>
    %129 = arith.addf %127, %128 : vector<2x32xf32>
    %130 = math.tanh %129 : vector<2x32xf32>
    %131 = arith.mulf %126, %130 : vector<2x32xf32>
    %c2_69 = arith.constant 2 : index
    %c0_70 = arith.constant 0 : index
    %c0_71 = arith.constant 0 : index
    %132 = vector.load %arg9[%c2_69, %c0_70, %c0_71] : memref<4x2x32xf32, #tpu.memory_space<vmem>>, vector<1x2x32xf32>
    %133 = vector.shape_cast %132 : vector<1x2x32xf32> to vector<2x32xf32>
    %134 = vector.shape_cast %131 : vector<2x32xf32> to vector<1x2x32xf32>
    tpu.vector_store %arg9[%c2_69, %c0_70, %c0_71], %134 {strides = array<i32>} : memref<4x2x32xf32, #tpu.memory_space<vmem>>, vector<1x2x32xf32>,
    %c2_72 = arith.constant 2 : index
    %c0_73 = arith.constant 0 : index
    %c0_74 = arith.constant 0 : index
    %135 = vector.load %arg10[%c2_72, %c0_73, %c0_74] : memref<4x2x32xf32, #tpu.memory_space<vmem>>, vector<1x2x32xf32>
    %136 = vector.shape_cast %135 : vector<1x2x32xf32> to vector<2x32xf32>
    %137 = vector.shape_cast %129 : vector<2x32xf32> to vector<1x2x32xf32>
    tpu.vector_store %arg10[%c2_72, %c0_73, %c0_74], %137 {strides = array<i32>} : memref<4x2x32xf32, #tpu.memory_space<vmem>>, vector<1x2x32xf32>,
    %c3 = arith.constant 3 : index
    %c0_75 = arith.constant 0 : index
    %c0_76 = arith.constant 0 : index
    %138 = vector.load %arg2[%c3, %c0_75, %c0_76] : memref<4x2x32xf32, #tpu.memory_space<vmem>>, vector<1x2x32xf32>
    %139 = vector.shape_cast %138 : vector<1x2x32xf32> to vector<2x32xf32>
    %c3_77 = arith.constant 3 : index
    %c0_78 = arith.constant 0 : index
    %c0_79 = arith.constant 0 : index
    %140 = vector.load %arg3[%c3_77, %c0_78, %c0_79] : memref<4x2x32xf32, #tpu.memory_space<vmem>>, vector<1x2x32xf32>
    %141 = vector.shape_cast %140 : vector<1x2x32xf32> to vector<2x32xf32>
    %c2_80 = arith.constant 2 : index
    %c0_81 = arith.constant 0 : index
    %c0_82 = arith.constant 0 : index
    %142 = vector.load %arg5[%c2_80, %c0_81, %c0_82] : memref<3x32x128xf32, #tpu.memory_space<vmem>>, vector<1x32x128xf32>
    %143 = vector.shape_cast %142 : vector<1x32x128xf32> to vector<32x128xf32>
    %cst_83 = arith.constant dense<0.000000e+00> : vector<2x128xf32>
    %144 = tpu.matmul %131, %143, %cst_83 {dimension_numbers = #tpu.dot_dimension_numbers<[1], [0], [0], [1], [0, 0, 1, 1], [], []>} : vector<2x32xf32>, vector<32x128xf32>, vector<2x128xf32> -> vector<2x128xf32>
    %c3_84 = arith.constant 3 : index
    %c0_85 = arith.constant 0 : index
    %c0_86 = arith.constant 0 : index
    %145 = vector.load %arg6[%c3_84, %c0_85, %c0_86] : memref<4x32x128xf32, #tpu.memory_space<vmem>>, vector<1x32x128xf32>
    %146 = vector.shape_cast %145 : vector<1x32x128xf32> to vector<32x128xf32>
    %cst_87 = arith.constant dense<0.000000e+00> : vector<2x128xf32>
    %147 = tpu.matmul %139, %146, %cst_87 {dimension_numbers = #tpu.dot_dimension_numbers<[1], [0], [0], [1], [0, 0, 1, 1], [], []>} : vector<2x32xf32>, vector<32x128xf32>, vector<2x128xf32> -> vector<2x128xf32>
    %148 = arith.addf %144, %147 : vector<2x128xf32>
    %c3_88 = arith.constant 3 : index
    %c0_89 = arith.constant 0 : index
    %c0_90 = arith.constant 0 : index
    %149 = vector.load %arg7[%c3_88, %c0_89, %c0_90] : memref<4x1x128xf32, #tpu.memory_space<vmem>>, vector<1x1x128xf32>
    %150 = vector.shape_cast %149 : vector<1x1x128xf32> to vector<1x128xf32>
    %151 = vector.broadcast %150 : vector<1x128xf32> to vector<2x128xf32>
    %152 = arith.addf %148, %151 : vector<2x128xf32>
    %153 = vector.extract_strided_slice %152 {offsets = [0, 0], sizes = [2, 32], strides = [1, 1]} : vector<2x128xf32> to vector<2x32xf32>
    %154 = arith.negf %153 : vector<2x32xf32>
    %155 = math.exp %154 : vector<2x32xf32>
    %cst_91 = arith.constant 1.000000e+00 : f32
    %156 = vector.broadcast %cst_91 : f32 to vector<2x32xf32>
    %157 = arith.addf %156, %155 : vector<2x32xf32>
    %158 = arith.divf %156, %157 : vector<2x32xf32>
    %159 = vector.extract_strided_slice %152 {offsets = [0, 32], sizes = [2, 32], strides = [1, 1]} : vector<2x128xf32> to vector<2x32xf32>
    %160 = arith.negf %159 : vector<2x32xf32>
    %161 = math.exp %160 : vector<2x32xf32>
    %cst_92 = arith.constant 1.000000e+00 : f32
    %162 = vector.broadcast %cst_92 : f32 to vector<2x32xf32>
    %163 = arith.addf %162, %161 : vector<2x32xf32>
    %164 = arith.divf %162, %163 : vector<2x32xf32>
    %165 = vector.extract_strided_slice %152 {offsets = [0, 64], sizes = [2, 32], strides = [1, 1]} : vector<2x128xf32> to vector<2x32xf32>
    %166 = math.tanh %165 : vector<2x32xf32>
    %167 = vector.extract_strided_slice %152 {offsets = [0, 96], sizes = [2, 32], strides = [1, 1]} : vector<2x128xf32> to vector<2x32xf32>
    %168 = arith.negf %167 : vector<2x32xf32>
    %169 = math.exp %168 : vector<2x32xf32>
    %cst_93 = arith.constant 1.000000e+00 : f32
    %170 = vector.broadcast %cst_93 : f32 to vector<2x32xf32>
    %171 = arith.addf %170, %169 : vector<2x32xf32>
    %172 = arith.divf %170, %171 : vector<2x32xf32>
    %173 = arith.mulf %164, %141 : vector<2x32xf32>
    %174 = arith.mulf %158, %166 : vector<2x32xf32>
    %175 = arith.addf %173, %174 : vector<2x32xf32>
    %176 = math.tanh %175 : vector<2x32xf32>
    %177 = arith.mulf %172, %176 : vector<2x32xf32>
    %c3_94 = arith.constant 3 : index
    %c0_95 = arith.constant 0 : index
    %c0_96 = arith.constant 0 : index
    %178 = vector.load %arg9[%c3_94, %c0_95, %c0_96] : memref<4x2x32xf32, #tpu.memory_space<vmem>>, vector<1x2x32xf32>
    %179 = vector.shape_cast %178 : vector<1x2x32xf32> to vector<2x32xf32>
    %180 = vector.shape_cast %177 : vector<2x32xf32> to vector<1x2x32xf32>
    tpu.vector_store %arg9[%c3_94, %c0_95, %c0_96], %180 {strides = array<i32>} : memref<4x2x32xf32, #tpu.memory_space<vmem>>, vector<1x2x32xf32>,
    %c3_97 = arith.constant 3 : index
    %c0_98 = arith.constant 0 : index
    %c0_99 = arith.constant 0 : index
    %181 = vector.load %arg10[%c3_97, %c0_98, %c0_99] : memref<4x2x32xf32, #tpu.memory_space<vmem>>, vector<1x2x32xf32>
    %182 = vector.shape_cast %181 : vector<1x2x32xf32> to vector<2x32xf32>
    %183 = vector.shape_cast %175 : vector<2x32xf32> to vector<1x2x32xf32>
    tpu.vector_store %arg10[%c3_97, %c0_98, %c0_99], %183 {strides = array<i32>} : memref<4x2x32xf32, #tpu.memory_space<vmem>>, vector<1x2x32xf32>,
    %c0_100 = arith.constant 0 : index
    %c0_101 = arith.constant 0 : index
    %184 = vector.load %arg8[%c0_100, %c0_101] : memref<2x32xf32, #tpu.memory_space<vmem>>, vector<2x32xf32>
    tpu.vector_store %arg8[%c0_100, %c0_101], %177 {strides = array<i32>} : memref<2x32xf32, #tpu.memory_space<vmem>>, vector<2x32xf32>,
    return
  }
  func.func @transform_0(%arg0: i32) -> (i32, i32) {
    %c0_i32 = arith.constant 0 : i32
    %c0_i32_0 = arith.constant 0 : i32
    return %arg0, %c0_i32 : i32, i32
  }
  func.func @transform_1(%arg0: i32) -> (i32, i32, i32) {
    %c0_i32 = arith.constant 0 : i32
    %c0_i32_0 = arith.constant 0 : i32
    %c0_i32_1 = arith.constant 0 : i32
    return %c0_i32, %arg0, %c0_i32_0 : i32, i32, i32
  }
  func.func @transform_2(%arg0: i32) -> (i32, i32, i32) {
    %c0_i32 = arith.constant 0 : i32
    %c0_i32_0 = arith.constant 0 : i32
    %c0_i32_1 = arith.constant 0 : i32
    return %c0_i32, %arg0, %c0_i32_0 : i32, i32, i32
  }
  func.func @transform_3(%arg0: i32) -> (i32, i32) {
    %c0_i32 = arith.constant 0 : i32
    %c0_i32_0 = arith.constant 0 : i32
    %c0_i32_1 = arith.constant 0 : i32
    return %c0_i32, %c0_i32_0 : i32, i32
  }
  func.func @transform_4(%arg0: i32) -> (i32, i32, i32) {
    %c0_i32 = arith.constant 0 : i32
    %c0_i32_0 = arith.constant 0 : i32
    %c0_i32_1 = arith.constant 0 : i32
    %c0_i32_2 = arith.constant 0 : i32
    return %c0_i32, %c0_i32_0, %c0_i32_1 : i32, i32, i32
  }
  func.func @transform_5(%arg0: i32) -> (i32, i32, i32) {
    %c0_i32 = arith.constant 0 : i32
    %c0_i32_0 = arith.constant 0 : i32
    %c0_i32_1 = arith.constant 0 : i32
    %c0_i32_2 = arith.constant 0 : i32
    return %c0_i32, %c0_i32_0, %c0_i32_1 : i32, i32, i32
  }
  func.func @transform_6(%arg0: i32) -> (i32, i32, i32) {
    %c0_i32 = arith.constant 0 : i32
    %c0_i32_0 = arith.constant 0 : i32
    %c0_i32_1 = arith.constant 0 : i32
    %c0_i32_2 = arith.constant 0 : i32
    return %c0_i32, %c0_i32_0, %c0_i32_1 : i32, i32, i32
  }
  func.func @transform_7(%arg0: i32) -> (i32, i32) {
    %c0_i32 = arith.constant 0 : i32
    %c0_i32_0 = arith.constant 0 : i32
    return %arg0, %c0_i32 : i32, i32
  }
  func.func @transform_8(%arg0: i32) -> (i32, i32, i32) {
    %c0_i32 = arith.constant 0 : i32
    %c0_i32_0 = arith.constant 0 : i32
    %c0_i32_1 = arith.constant 0 : i32
    return %c0_i32, %arg0, %c0_i32_0 : i32, i32, i32
  }
  func.func @transform_9(%arg0: i32) -> (i32, i32, i32) {
    %c0_i32 = arith.constant 0 : i32
    %c0_i32_0 = arith.constant 0 : i32
    %c0_i32_1 = arith.constant 0 : i32
    return %c0_i32, %arg0, %c0_i32_0 : i32, i32, i32
  }
}

</mosaic_0001>

<bundles_post_ra>
// kernel: tpu_custom_call.1
= control target key start
LH: loop header
LB: loop body
LE: loop exit
PB: predicated region body
PF: predicated region fallthrough
CT: control target
= control target key end

     0   :  { %15 = vsyncpa [#allocation3], 0  ;;  %s1618_s0 = inlined_call_operand.hbm [shape: f32[2,48], index: 0, kind: input, shape index: {}]   ;;  %s1619_s1 = inlined_call_operand.hbm [shape: f32[4,2,32], index: 1, kind: input, shape index: {}]   ;;  %s1620_s2 = inlined_call_operand.hbm [shape: f32[4,2,32], index: 2, kind: input, shape index: {}]   ;;  %s1621_s3 = inlined_call_operand.hbm [shape: f32[48,128], index: 3, kind: input, shape index: {}]   ;;  %s1622_s4 = inlined_call_operand.hbm [shape: f32[3,32,128], index: 4, kind: input, shape index: {}]   ;;  %s1623_s5 = inlined_call_operand.hbm [shape: f32[4,32,128], index: 5, kind: input, shape index: {}]   ;;  %s1624_s6 = inlined_call_operand.vmem [shape: f32[4,1,128], index: 6, kind: input, shape index: {}]   ;;  %s1625_s7 = inlined_call_operand.hbm [shape: f32[2,32], index: 7, kind: output, shape index: {0}]   ;;  %s1626_s8 = inlined_call_operand.hbm [shape: f32[4,2,32], index: 8, kind: output, shape index: {1}]   ;;  %s1627_s9 = inlined_call_operand.hbm [shape: f32[4,2,32], index: 9, kind: output, shape index: {2}]  }
   0x1   :  { %16 = vsyncpa [#allocation6], 0 }
   0x2   :  { %17 = vsyncpa [#allocation9], 0 }
   0x3   :  { %18 = vsyncpa [#allocation12], 0 }
   0x4   :  { %19 = vsyncpa [#allocation4], 0 }
   0x5   :  { %20 = vsyncpa [#allocation15], 0  ;;  %s1386_s30 = smov [#allocation5]  }
   0x6   :  { %s36_s10 = sshll.u32 %s1386_s30, 4  ;;  %s37_s10 = int_to_ptr.vmem [resolvable:$true] %s36_s10 }
   0x7   :  { %s1202_s11 = scalar_lea.vmem %s37_s10, 128  ;;  %p1207_p1 = scmp.lt.s32.totalorder %s37_s10, %s37_s10 }
   0x8   :  { %p1203_p0 = scmp.ne.s32.totalorder %s37_s10, %s1202_s11  ;;  %p1208_p2 = scmp.lt.s32.totalorder %s1202_s11, %s1202_s11 }
   0xa   :  { %p1209_p3 = por %p1208_p2, %p1207_p1 }
   0xc   :  { %p1210_p4 = pnand %p1209_p3, %p1203_p0 }
   0xe   :  { %1213 = shalt.err (!%p1210_p4)
}
   0xf   :  { %s1387_s12 = smov 32   ;;  %s1388_s13 = smov 2  }
  0x10   :  { %42 = dma.hbm_to_vmem [thread:$0]  %s1619_s1, 128, %s37_s10, [#allocation6], %s1387_s12, %s1387_s12, %s1388_s13  }
  0x11   :  { %s1389_s16 = smov [#allocation8]  }
  0x12   :  { %s60_s17 = sshll.u32 %s1389_s16, 4  ;;  %s61_s17 = int_to_ptr.vmem [resolvable:$true] %s60_s17 }
  0x13   :  { %s1222_s18 = scalar_lea.vmem %s61_s17, 768  ;;  %p1227_p6 = scmp.lt.s32.totalorder %s61_s17, %s61_s17 }
  0x14   :  { %p1223_p5 = scmp.ne.s32.totalorder %s61_s17, %s1222_s18  ;;  %p1228_p7 = scmp.lt.s32.totalorder %s1222_s18, %s1222_s18 }
  0x16   :  { %p1229_p8 = por %p1228_p7, %p1227_p6 }
  0x18   :  { %p1230_p9 = pnand %p1229_p8, %p1223_p5 }
  0x1a   :  { %1233 = shalt.err (!%p1230_p9)
}
  0x1b   :  { %s1390_s19 = smov 128   ;;  %s1391_s20 = smov 8  }
  0x1c   :  { %66 = dma.hbm_to_vmem [thread:$0]  %s1621_s3, 768, %s61_s17, [#allocation9], %s1390_s19, %s1390_s19, %s1391_s20  }
  0x1d   :  { %s1392_s1 = smov [#allocation2]   ;;  %s1393_s24 = smov [#allocation7]  }
  0x1e   :  { %s27_s23 = sshll.u32 %s1392_s1, 4  ;;  %s48_s25 = sshll.u32 %s1393_s24, 4  ;;  %s28_s23 = int_to_ptr.vmem [resolvable:$true] %s27_s23  ;;  %s49_s25 = int_to_ptr.vmem [resolvable:$true] %s48_s25 }
  0x1f   :  { %s1242_s26 = scalar_lea.vmem %s28_s23, 32  ;;  %p1247_p11 = scmp.lt.s32.totalorder %s28_s23, %s28_s23 }
  0x20   :  { %p1243_p10 = scmp.ne.s32.totalorder %s28_s23, %s1242_s26  ;;  %p1248_p12 = scmp.lt.s32.totalorder %s1242_s26, %s1242_s26 }
  0x22   :  { %p1249_p13 = por %p1248_p12, %p1247_p11 }
  0x24   :  { %p1250_p0 = pnand %p1249_p13, %p1243_p10 }
  0x26   :  { %1253 = shalt.err (!%p1250_p0)
}
  0x27   :  { %30 = dma.hbm_to_vmem [thread:$0]  %s1618_s0, 32, %s28_s23, [#allocation3]  }
  0x28   :  { %s1262_s29 = scalar_lea.vmem %s49_s25, 128  ;;  %p1267_p2 = scmp.lt.s32.totalorder %s49_s25, %s49_s25 }
  0x29   :  { %p1263_p1 = scmp.ne.s32.totalorder %s49_s25, %s1262_s29  ;;  %p1268_p3 = scmp.lt.s32.totalorder %s1262_s29, %s1262_s29 }
  0x2b   :  { %p1269_p4 = por %p1268_p3, %p1267_p2 }
  0x2d   :  { %p1270_p5 = pnand %p1269_p4, %p1263_p1 }
  0x2f   :  { %1273 = shalt.err (!%p1270_p5)
}
  0x30   :  { %54 = dma.hbm_to_vmem [thread:$0]  %s1620_s2, 128, %s49_s25, [#allocation6], %s1387_s12, %s1387_s12, %s1388_s13  }
  0x31   :  { %s1394_s10 = smov [#allocation10]   ;;  %s1395_s14 = smov [#allocation11]  }
  0x32   :  { %s72_s11 = sshll.u32 %s1394_s10, 4  ;;  %s84_s15 = sshll.u32 %s1395_s14, 4  ;;  %s73_s11 = int_to_ptr.vmem [resolvable:$true] %s72_s11  ;;  %s85_s15 = int_to_ptr.vmem [resolvable:$true] %s84_s15 }
  0x33   :  { %s1282_s0 = scalar_lea.vmem %s73_s11, 1536  ;;  %p1287_p7 = scmp.lt.s32.totalorder %s73_s11, %s73_s11 }
  0x34   :  { %p1283_p6 = scmp.ne.s32.totalorder %s73_s11, %s1282_s0  ;;  %p1288_p8 = scmp.lt.s32.totalorder %s1282_s0, %s1282_s0 }
  0x36   :  { %p1289_p9 = por %p1288_p8, %p1287_p7 }
  0x38   :  { %p1290_p10 = pnand %p1289_p9, %p1283_p6 }
  0x3a   :  { %1293 = shalt.err (!%p1290_p10)
}
  0x3b   :  { %78 = dma.hbm_to_vmem [thread:$0]  %s1622_s4, 1536, %s73_s11, [#allocation9], %s1390_s19, %s1390_s19, %s1391_s20  }
  0x3c   :  { %s1302_s2 = scalar_lea.vmem %s85_s15, 2048  ;;  %p1307_p12 = scmp.lt.s32.totalorder %s85_s15, %s85_s15 }
  0x3d   :  { %p1303_p11 = scmp.ne.s32.totalorder %s85_s15, %s1302_s2  ;;  %p1308_p13 = scmp.lt.s32.totalorder %s1302_s2, %s1302_s2 }
  0x3f   :  { %p1309_p0 = por %p1308_p13, %p1307_p12 }
  0x41   :  { %p1310_p1 = pnand %p1309_p0, %p1303_p11 }
  0x43   :  { %1313 = shalt.err (!%p1310_p1)
}
  0x44   :  { %90 = dma.hbm_to_vmem [thread:$0]  %s1623_s5, 2048, %s85_s15, [#allocation12], %s1390_s19, %s1390_s19, %s1391_s20  }
  0x45   :  { %1374 = dma.done.wait [#allocation3], 32  }
  0x46   :  { %1375 = vsyncadd [#allocation3], 4294967264 }
  0x47   :  { %1376 = dma.done.wait [#allocation6], 256  }
  0x48   :  { %1377 = vsyncadd [#allocation6], 4294967040 }
  0x49   :  { %1378 = dma.done.wait [#allocation9], 2304  }
  0x4a   :  { %1379 = vsyncadd [#allocation9], 4294964992 }
  0x4b   :  { %1380 = dma.done.wait [#allocation12], 2048  }
  0x4c   :  { %1381 = vsyncadd [#allocation12], 4294965248  ;;  %v1396_v0 = vmov 0.0   ;;  %vm1397_vm0 = vmmov 0   ;;  %v119_v1 = vld [vmem:[#allocation8 + $0x28] sm:$0xff]  ;;  %v118_v3 = vld [vmem:[#allocation8 + $0x20] sm:$0xff] }
  0x4d   :  { %1064 = vmatprep.subr.mxu1 %v1396_v0  ;;  %1053 = vmatprep.subr.mxu0 %v1396_v0  ;;  %v123_v2 = vld [vmem:[#allocation11 + $0x18] sm:$0xff]  ;;  %v122_v4 = vld [vmem:[#allocation11 + $0x10] sm:$0xff]  ;;  %v117_v5 = vld [vmem:[#allocation8 + $0x18] sm:$0xff]  ;;  %vm124_vm1 = vcmask 261120   ;;  %vm198_vm2 = vcmask 392192   ;;  %s1398_s19 = smov 64  }
  0x4e   :  { %1061 = vmatprep.mubr.msk.f32.mxu0 %vm1397_vm0, %v1396_v0  ;;  %1076 = vmatprep.mubr.msk.f32.mxu1 %vm1397_vm0, %v1396_v0  ;;  %v121_v6 = vld [vmem:[#allocation11 + $0x8] sm:$0xff]  ;;  %v116_v7 = vld [vmem:[#allocation8 + $0x10] sm:$0xff]  ;;  %v115_v10 = vld [vmem:[#allocation8 + $0x8] sm:$0xff]  ;;  %vm312_vm3 = vcmask 254976   ;;  %s1399_s26 = smov 96   ;;  %s1401_s28 = smov [#allocation13]  }
  0x4f   :  { %1065 = vmatpush3.msra.mxu1 %v119_v1  ;;  %1054 = vmatpush3.msra.mxu0 %v123_v2  ;;  %v120_v8 = vld [vmem:[#allocation11] sm:$0xff]  ;;  %v114_v11 = vld [vmem:[#allocation8] sm:$0xff]  ;;  %v111_v12 = vld [vmem:[#allocation2] sm:$0x3]  ;;  %s949_s29 = sshll.u32 %s1401_s28, 4  ;;  %s1402_s3 = smov [#allocation16]   ;;  %s950_s29 = int_to_ptr.vmem [resolvable:$true] %s949_s29 }
  0x50   :  { %1066 = vmatprep.subr.mxu1 %v1396_v0  ;;  %1055 = vmatprep.subr.mxu0 %v1396_v0  ;;  %v112_v9 = vld [vmem:[#allocation5] sm:$0x3]  ;;  %v994_v16 = vld [vmem:[%s1624_s6] ss:$0 sm:$0xff]  ;;  %v113_v21 = vld [vmem:[#allocation7] sm:$0x3] }
  0x51   :  { %1067 = vmatpush3.msra.mxu1 %v118_v3  ;;  %1056 = vmatpush3.msra.mxu0 %v122_v4  ;;  %v331_v32 = vld [vmem:[#allocation11 + $0x38] sm:$0xff]  ;;  %v330_v33 = vld [vmem:[#allocation11 + $0x30] sm:$0xff]  ;;  %v329_v36 = vld [vmem:[#allocation11 + $0x28] sm:$0xff]  ;;  %s970_s30 = sshll.u32 %s1402_s3, 4  ;;  %s1595_s30 = int_to_ptr.vmem [resolvable:$true] %s970_s30 }
  0x52   :  { %1068 = vmatprep.subr.mxu1 %v1396_v0  ;;  %1057 = vmatprep.subr.mxu0 %v1396_v0  ;;  %v326_v34 = vld [vmem:[#allocation10 + $0x18] sm:$0xff]  ;;  %v325_v35 = vld [vmem:[#allocation10 + $0x10] sm:$0xff]  ;;  %v324_v37 = vld [vmem:[#allocation10 + $0x8] sm:$0xff] }
  0x53   :  { %1069 = vmatpush3.msra.mxu1 %v117_v5  ;;  %1058 = vmatpush3.msra.mxu0 %v121_v6  ;;  %v328_v38 = vld [vmem:[#allocation11 + $0x20] sm:$0xff]  ;;  %v322_v44 = vld [vmem:[#allocation7 + $0x2] sm:$0x3]  ;;  %v999_v49 = vld [vmem:[%s1624_s6 + $0x1] ss:$0 sm:$0xff] }
  0x54   :  { %1070 = vmatprep.subr.mxu1 %v1396_v0  ;;  %1059 = vmatprep.subr.mxu0 %v1396_v0  ;;  %v323_v39 = vld [vmem:[#allocation10] sm:$0xff]  ;;  %v539_v1 = vld [vmem:[#allocation11 + $0x58] sm:$0xff]  ;;  %v538_v2 = vld [vmem:[#allocation11 + $0x50] sm:$0xff] }
  0x55   :  { %1071 = vmatpush3.msra.mxu1 %v116_v7  ;;  %1060 = vmatpush3.msra.mxu0 %v120_v8  ;;  %v320_v40 = vld [vmem:[#allocation5 + $0x2] sm:$0x3]  ;;  %v534_v3 = vld [vmem:[#allocation10 + $0x38] sm:$0xff]  ;;  %v533_v4 = vld [vmem:[#allocation10 + $0x30] sm:$0xff] }
  0x56   :  { %1072 = vmatprep.subr.mxu1 %v1396_v0  ;;  %1062 = vmatmul.mubr.msk.f32.vlgmr.msra.gmra.mxu0 %vm124_vm1, %v112_v9  ;;  %v537_v5 = vld [vmem:[#allocation11 + $0x48] sm:$0xff]  ;;  %v536_v7 = vld [vmem:[#allocation11 + $0x40] sm:$0xff] }
  0x57   :  { %1073 = vmatpush3.msra.mxu1 %v115_v10  ;;  %1079 = vmatprep.subr.mxu0 %v1396_v0  ;;  %v532_v6 = vld [vmem:[#allocation10 + $0x28] sm:$0xff]  ;;  %v531_v8 = vld [vmem:[#allocation10 + $0x20] sm:$0xff] }
  0x58   :  { %1074 = vmatprep.subr.mxu1 %v1396_v0  ;;  %1087 = vmatprep.mubr.msk.f32.mxu0 %vm1397_vm0, %v1396_v0  ;;  %v527_v9 = vld [vmem:[#allocation5 + $0x4] sm:$0x3] }
  0x59   :  { %1075 = vmatpush3.msra.mxu1 %v114_v11  ;;  %1080 = vmatpush3.msra.mxu0 %v331_v32 }
  0x5a   :  { %1077 = vmatmul.mubr.msk.f32.vlgmr.msra.gmra.mxu1 %vm198_vm2, %v111_v12  ;;  %1090 = vmatprep.subr.mxu1 %v1396_v0 }
  0x5b   :  { %1098 = vmatprep.mubr.msk.f32.mxu1 %vm1397_vm0, %v1396_v0  ;;  %1091 = vmatpush3.msra.mxu1 %v326_v34  ;;  %v747_v34 = vld [vmem:[#allocation11 + $0x78] sm:$0xff] }
  0x5c   :  { %1081 = vmatprep.subr.mxu0 %v1396_v0  ;;  %1092 = vmatprep.subr.mxu1 %v1396_v0 }
  0x5d   :  { %1082 = vmatpush3.msra.mxu0 %v330_v33  ;;  %1093 = vmatpush3.msra.mxu1 %v325_v35  ;;  %v746_v35 = vld [vmem:[#allocation11 + $0x70] sm:$0xff] }
  0x5e   :  { %1083 = vmatprep.subr.mxu0 %v1396_v0  ;;  %1094 = vmatprep.subr.mxu1 %v1396_v0 }
  0x5f   :  { %1084 = vmatpush3.msra.mxu0 %v329_v36  ;;  %1095 = vmatpush3.msra.mxu1 %v324_v37  ;;  %v742_v36 = vld [vmem:[#allocation10 + $0x58] sm:$0xff]  ;;  %v741_v37 = vld [vmem:[#allocation10 + $0x50] sm:$0xff] }
  0x60   :  { %1085 = vmatprep.subr.mxu0 %v1396_v0  ;;  %1096 = vmatprep.subr.mxu1 %v1396_v0 }
  0x61   :  { %1086 = vmatpush3.msra.mxu0 %v328_v38  ;;  %1097 = vmatpush3.msra.mxu1 %v323_v39  ;;  %v745_v38 = vld [vmem:[#allocation11 + $0x68] sm:$0xff] }
  0x62   :  { %1088 = vmatmul.mubr.msk.f32.vlgmr.msra.gmra.mxu0 %vm124_vm1, %v320_v40  ;;  %1101 = vmatprep.subr.mxu0 %v1396_v0  ;;  %v740_v39 = vld [vmem:[#allocation10 + $0x48] sm:$0xff]  ;;  %v744_v40 = vld [vmem:[#allocation11 + $0x60] sm:$0xff] }
  0x63   :  { %1112 = vmatprep.subr.mxu1 %v1396_v0  ;;  %1109 = vmatprep.mubr.msk.f32.mxu0 %vm1397_vm0, %v1396_v0 }
  0x64   :  { %1102 = vmatpush3.msra.mxu0 %v539_v1 }
  0x65   :  { %1103 = vmatprep.subr.mxu0 %v1396_v0 }
  0x66   :  { %1104 = vmatpush3.msra.mxu0 %v538_v2 }
  0x67   :  { %1105 = vmatprep.subr.mxu0 %v1396_v0 }
  0x68   :  { %1106 = vmatpush3.msra.mxu0 %v537_v5 }
  0x69   :  { %1107 = vmatprep.subr.mxu0 %v1396_v0 }
  0x6a   :  { %1108 = vmatpush3.msra.mxu0 %v536_v7 }
  0x6b   :  { %1110 = vmatmul.mubr.msk.f32.vlgmr.msra.gmra.mxu0 %vm124_vm1, %v527_v9  ;;  %1123 = vmatprep.subr.mxu0 %v1396_v0 }
  0x6c   :  { %1131 = vmatprep.mubr.msk.f32.mxu0 %vm1397_vm0, %v1396_v0  ;;  %1124 = vmatpush3.msra.mxu0 %v747_v34 }
  0x6d   :  { %1125 = vmatprep.subr.mxu0 %v1396_v0 }
  0x6e   :  { %1126 = vmatpush3.msra.mxu0 %v746_v35 }
  0x6f   :  { %1127 = vmatprep.subr.mxu0 %v1396_v0 }
  0x70   :  { %1128 = vmatpush3.msra.mxu0 %v745_v38 }
  0x71   :  { %1129 = vmatprep.subr.mxu0 %v1396_v0 }
  0x72   :  { %1130 = vmatpush3.msra.mxu0 %v744_v40 }
 0x116   :  { %v194_v13 = vpop.f32.mrf.mxu0 }
 0x118   :  { %v1063_v14 = vpop.f32.mrf.mxu0 }
 0x11a   :  { %v268_v15 = vpop.f32.mrf.mxu1 }
 0x11b   :  { %v269_v17 = vadd.f32 %v268_v15, %v194_v13  ;;  %v529_v13 = vld [vmem:[#allocation7 + $0x4] sm:$0x3] }
 0x11c   :  { %v1078_v18 = vpop.f32.mrf.mxu1 }
 0x11d   :  { %v279_v19 = vadd.f32 %v994_v16, %v269_v17  ;;  %v1004_v18 = vld [vmem:[%s1624_s6 + $0x2] ss:$0 sm:$0xff] }
 0x11f   :  { %1162 = vtanh.f32 %v279_v19  ;;  %v995_v22 = vmul.f32 -1.442695, %v279_v19 }
 0x121   :  { %1164 = vpow2.f32 %v995_v22 }
 0x122   :  { %v401_v45 = vpop.f32.mrf.mxu0 }
 0x124   :  { %v1089_v46 = vpop.f32.mrf.mxu0 }
 0x125   :  { %v737_v46 = vld [vmem:[#allocation7 + $0x6] sm:$0x3] }
 0x12b   :  { %v609_v14 = vpop.f32.mrf.mxu0 }
 0x12c   :  { %v1163_v20 = vpop.eup %1162 }
 0x12d   :  { %293 = vrot.lane.b32.xlu0 %v1163_v20, %s1398_s19  ;;  %v1111_v15 = vpop.f32.mrf.mxu0 }
 0x12e   :  { %v1165_v23 = vpop.eup %1164 }
 0x12f   :  { %v283_v24 = vadd.f32 1.0, %v1165_v23 }
 0x131   :  { %288 = vrot.lane.b32.xlu0 %v113_v21, %s1387_s12  ;;  %1166 = vrcp.f32 %v283_v24 }
 0x13e   :  { %v1167_v25 = vpop.eup %1166 }
 0x19f   :  { %v294_v26 = vpop.permute.xlu0 %293 }
 0x1a0   :  { %v296_v27 = vmul.f32 %v1167_v25, %v294_v26 }
 0x1a2   :  { %298 = vrot.lane.b32.xlu1 %v296_v27, %s1387_s12 }
 0x1a3   :  { %v289_v28 = vpop.permute.xlu0 %288 }
 0x1a4   :  { %v291_v29 = vmul.f32 %v1167_v25, %v289_v28 }
 0x214   :  { %v299_v30 = vpop.permute.xlu1 %298 }
 0x215   :  { %v1513_v31 = vadd.f32 %v299_v30, %v291_v29 }
 0x217   :  { %1168 = vtanh.f32 %v1513_v31 }
 0x224   :  { %v1169_v41 = vpop.eup %1168 }
 0x225   :  { %304 = vrot.lane.b32.xlu1 %v1169_v41, %s1398_s19  ;;  %v739_v41 = vld [vmem:[#allocation10 + $0x40] sm:$0xff] }
 0x297   :  { %v305_v42 = vpop.permute.xlu1 %304 }
 0x298   :  { %v307_v43 = vmul.f32 %v1167_v25, %v305_v42  ;;  %v735_v42 = vld [vmem:[#allocation5 + $0x6] sm:$0x3] }
 0x299   :  { %1132 = vmatmul.mubr.msk.f32.vlgmr.msra.gmra.mxu0 %vm124_vm1, %v735_v42 }
 0x29a   :  { %309 = vrot.lane.b32.xlu0 %v307_v43, %s1387_s12 }
 0x29e   :  { %494 = vrot.lane.b32.xlu0 %v322_v44, %s1387_s12 }
 0x30c   :  { %v310_v47 = vpop.permute.xlu0 %309 }
 0x30d   :  { %313 = vst.msk [vmem:[#allocation14] sm:$0x3] %vm312_vm3, %v310_v47  ;;  %1099 = vmatmul.mubr.msk.f32.vlgmr.msra.gmra.mxu1 %vm124_vm1, %v310_v47 }
 0x30e   :  { %1120 = vmatprep.mubr.msk.f32.mxu1 %vm1397_vm0, %v1396_v0  ;;  %1113 = vmatpush3.msra.mxu1 %v534_v3 }
 0x30f   :  { %1114 = vmatprep.subr.mxu1 %v1396_v0 }
 0x310   :  { %v495_v60 = vpop.permute.xlu0 %494  ;;  %1115 = vmatpush3.msra.mxu1 %v533_v4 }
 0x311   :  { %1116 = vmatprep.subr.mxu1 %v1396_v0 }
 0x312   :  { %1117 = vmatpush3.msra.mxu1 %v532_v6 }
 0x313   :  { %1118 = vmatprep.subr.mxu1 %v1396_v0 }
 0x314   :  { %1119 = vmatpush3.msra.mxu1 %v531_v8 }
 0x315   :  { %1134 = vmatprep.subr.mxu1 %v1396_v0 }
 0x359   :  { %v817_v47 = vpop.f32.mrf.mxu0 }
 0x3cd   :  { %v473_v48 = vpop.f32.mrf.mxu1 }
 0x3ce   :  { %v474_v50 = vadd.f32 %v473_v48, %v401_v45  ;;  %v1133_v48 = vpop.f32.mrf.mxu0 }
 0x3cf   :  { %v1100_v51 = vpop.f32.mrf.mxu1 }
 0x3d0   :  { %v485_v52 = vadd.f32 %v999_v49, %v474_v50  ;;  %v1009_v50 = vld [vmem:[%s1624_s6 + $0x3] ss:$0 sm:$0xff]  ;;  %s1400_s6 = smov [#allocation14]  }
 0x3d1   :  { %s958_s27 = sshll.u32 %s1400_s6, 4  ;;  %s959_s27 = int_to_ptr.vmem [resolvable:$true] %s958_s27 }
 0x3d2   :  { %1170 = vtanh.f32 %v485_v52  ;;  %v1000_v54 = vmul.f32 -1.442695, %v485_v52  ;;  %s1314_s10 = scalar_lea.vmem %s959_s27, 128  ;;  %p1319_p3 = scmp.lt.s32.totalorder %s959_s27, %s959_s27 }
 0x3d3   :  { %p1315_p2 = scmp.ne.s32.totalorder %s959_s27, %s1314_s10  ;;  %p1320_p4 = scmp.lt.s32.totalorder %s1314_s10, %s1314_s10 }
 0x3d4   :  { %1172 = vpow2.f32 %v1000_v54 }
 0x3d5   :  { %p1321_p5 = por %p1320_p4, %p1319_p3 }
 0x3d7   :  { %p1322_p6 = pnand %p1321_p5, %p1315_p2 }
 0x3df   :  { %v1171_v53 = vpop.eup %1170 }
 0x3e0   :  { %499 = vrot.lane.b32.xlu1 %v1171_v53, %s1398_s19 }
 0x3e1   :  { %v1173_v55 = vpop.eup %1172 }
 0x3e2   :  { %v489_v56 = vadd.f32 1.0, %v1173_v55 }
 0x3e4   :  { %1174 = vrcp.f32 %v489_v56 }
 0x3f1   :  { %v1175_v57 = vpop.eup %1174 }
 0x3f2   :  { %v497_v61 = vmul.f32 %v1175_v57, %v495_v60 }
 0x452   :  { %v500_v58 = vpop.permute.xlu1 %499 }
 0x453   :  { %v502_v59 = vmul.f32 %v1175_v57, %v500_v58 }
 0x455   :  { %504 = vrot.lane.b32.xlu1 %v502_v59, %s1387_s12 }
 0x4c7   :  { %v505_v62 = vpop.permute.xlu1 %504 }
 0x4c8   :  { %v1539_v63 = vadd.f32 %v505_v62, %v497_v61 }
 0x4ca   :  { %1176 = vtanh.f32 %v1539_v63 }
 0x4d7   :  { %v1177_v10 = vpop.eup %1176 }
 0x4d8   :  { %510 = vrot.lane.b32.xlu0 %v1177_v10, %s1398_s19 }
 0x54a   :  { %v511_v11 = vpop.permute.xlu0 %510 }
 0x54b   :  { %v513_v12 = vmul.f32 %v1175_v57, %v511_v11 }
 0x54d   :  { %515 = vrot.lane.b32.xlu1 %v513_v12, %s1387_s12 }
 0x551   :  { %702 = vrot.lane.b32.xlu1 %v529_v13, %s1387_s12 }
 0x5bf   :  { %v516_v16 = vpop.permute.xlu1 %515 }
 0x5c0   :  { %519 = vst.msk [vmem:[#allocation14 + $0x2] sm:$0x3] %vm312_vm3, %v516_v16  ;;  %1121 = vmatmul.mubr.msk.f32.vlgmr.msra.gmra.mxu1 %vm124_vm1, %v516_v16 }
 0x5c1   :  { %1142 = vmatprep.mubr.msk.f32.mxu1 %vm1397_vm0, %v1396_v0  ;;  %1135 = vmatpush3.msra.mxu1 %v742_v36 }
 0x5c2   :  { %1136 = vmatprep.subr.mxu1 %v1396_v0 }
 0x5c3   :  { %v703_v29 = vpop.permute.xlu1 %702  ;;  %1137 = vmatpush3.msra.mxu1 %v741_v37 }
 0x5c4   :  { %1138 = vmatprep.subr.mxu1 %v1396_v0 }
 0x5c5   :  { %1139 = vmatpush3.msra.mxu1 %v740_v39 }
 0x5c6   :  { %1140 = vmatprep.subr.mxu1 %v1396_v0 }
 0x5c7   :  { %1141 = vmatpush3.msra.mxu1 %v739_v41 }
 0x680   :  { %v681_v17 = vpop.f32.mrf.mxu1 }
 0x681   :  { %v682_v19 = vadd.f32 %v681_v17, %v609_v14 }
 0x682   :  { %v1122_v20 = vpop.f32.mrf.mxu1 }
 0x683   :  { %v693_v21 = vadd.f32 %v1004_v18, %v682_v19 }
 0x685   :  { %1178 = vtanh.f32 %v693_v21  ;;  %v1005_v23 = vmul.f32 -1.442695, %v693_v21 }
 0x687   :  { %1180 = vpow2.f32 %v1005_v23 }
 0x692   :  { %v1179_v22 = vpop.eup %1178 }
 0x693   :  { %707 = vrot.lane.b32.xlu0 %v1179_v22, %s1398_s19 }
 0x694   :  { %v1181_v24 = vpop.eup %1180 }
 0x695   :  { %v697_v25 = vadd.f32 1.0, %v1181_v24 }
 0x697   :  { %1182 = vrcp.f32 %v697_v25 }
 0x6a4   :  { %v1183_v26 = vpop.eup %1182 }
 0x6a5   :  { %v705_v30 = vmul.f32 %v1183_v26, %v703_v29 }
 0x705   :  { %v708_v27 = vpop.permute.xlu0 %707 }
 0x706   :  { %v710_v28 = vmul.f32 %v1183_v26, %v708_v27 }
 0x708   :  { %712 = vrot.lane.b32.xlu0 %v710_v28, %s1387_s12 }
 0x77a   :  { %v713_v32 = vpop.permute.xlu0 %712 }
 0x77b   :  { %v1565_v33 = vadd.f32 %v713_v32, %v705_v30 }
 0x77d   :  { %1184 = vtanh.f32 %v1565_v33 }
 0x78a   :  { %v1185_v43 = vpop.eup %1184 }
 0x78b   :  { %718 = vrot.lane.b32.xlu1 %v1185_v43, %s1398_s19 }
 0x7fd   :  { %v719_v44 = vpop.permute.xlu1 %718 }
 0x7fe   :  { %v721_v45 = vmul.f32 %v1183_v26, %v719_v44 }
 0x800   :  { %723 = vrot.lane.b32.xlu0 %v721_v45, %s1387_s12 }
 0x804   :  { %910 = vrot.lane.b32.xlu0 %v737_v46, %s1387_s12 }
 0x872   :  { %v724_v49 = vpop.permute.xlu0 %723 }
 0x873   :  { %727 = vst.msk [vmem:[#allocation14 + $0x4] sm:$0x3] %vm312_vm3, %v724_v49  ;;  %1143 = vmatmul.mubr.msk.f32.vlgmr.msra.gmra.mxu1 %vm124_vm1, %v724_v49 }
 0x876   :  { %v911_v61 = vpop.permute.xlu0 %910 }
 0x933   :  { %v889_v0 = vpop.f32.mrf.mxu1 }
 0x934   :  { %v890_v51 = vadd.f32 %v889_v0, %v817_v47 }
 0x935   :  { %v1144_v52 = vpop.f32.mrf.mxu1 }
 0x936   :  { %v901_v53 = vadd.f32 %v1009_v50, %v890_v51 }
 0x938   :  { %1186 = vtanh.f32 %v901_v53  ;;  %v1010_v55 = vmul.f32 -1.442695, %v901_v53 }
 0x93a   :  { %1188 = vpow2.f32 %v1010_v55 }
 0x945   :  { %v1187_v54 = vpop.eup %1186 }
 0x946   :  { %915 = vrot.lane.b32.xlu1 %v1187_v54, %s1398_s19 }
 0x947   :  { %v1189_v56 = vpop.eup %1188 }
 0x948   :  { %v905_v57 = vadd.f32 1.0, %v1189_v56 }
 0x94a   :  { %1190 = vrcp.f32 %v905_v57 }
 0x957   :  { %v1191_v58 = vpop.eup %1190 }
 0x958   :  { %v913_v62 = vmul.f32 %v1191_v58, %v911_v61 }
 0x9b8   :  { %v916_v59 = vpop.permute.xlu1 %915 }
 0x9b9   :  { %v918_v60 = vmul.f32 %v1191_v58, %v916_v59 }
 0x9bb   :  { %920 = vrot.lane.b32.xlu1 %v918_v60, %s1387_s12 }
 0x9bf   :  { %521 = vrot.lane.b32.xlu1 %v1539_v63, %s1399_s26 }
 0xa2d   :  { %v921_v1 = vpop.permute.xlu1 %920 }
 0xa2e   :  { %v923_v2 = vadd.f32 %v921_v1, %v913_v62 }
 0xa30   :  { %1192 = vtanh.f32 %v923_v2 }
 0xa31   :  { %v522_v3 = vpop.permute.xlu1 %521 }
 0xa32   :  { %525 = vst.msk [vmem:[#allocation16 + $0x2] sm:$0x3] %vm312_vm3, %v522_v3 }
 0xa3d   :  { %v1193_v4 = vpop.eup %1192 }
 0xa3e   :  { %926 = vrot.lane.b32.xlu0 %v1193_v4, %s1398_s19 }
 0xa42   :  { %315 = vrot.lane.b32.xlu0 %v1513_v31, %s1399_s26 }
 0xa46   :  { %729 = vrot.lane.b32.xlu0 %v1565_v33, %s1399_s26 }
 0xab0   :  { %v927_v5 = vpop.permute.xlu0 %926 }
 0xab1   :  { %v929_v6 = vmul.f32 %v1191_v58, %v927_v5 }
 0xab3   :  { %931 = vrot.lane.b32.xlu1 %v929_v6, %s1387_s12 }
 0xab4   :  { %v316_v63 = vpop.permute.xlu0 %315 }
 0xab5   :  { %318 = vst.msk [vmem:[#allocation16] sm:$0x3] %vm312_vm3, %v316_v63 }
 0xab7   :  { %937 = vrot.lane.b32.xlu1 %v923_v2, %s1399_s26 }
 0xab8   :  { %v730_v7 = vpop.permute.xlu0 %729 }
 0xab9   :  { %733 = vst.msk [vmem:[#allocation16 + $0x4] sm:$0x3] %vm312_vm3, %v730_v7 }
 0xb25   :  { %v932_v31 = vpop.permute.xlu1 %931 }
 0xb26   :  { %935 = vst.msk [vmem:[#allocation14 + $0x6] sm:$0x3] %vm312_vm3, %v932_v31  ;;  %942 = vst.msk [vmem:[#allocation13] sm:$0x3] %vm312_vm3, %v932_v31 }
 0xb27   :  { %1325 = shalt.err (!%p1322_p6)
}
 0xb28   :  { %964 = dma.vmem_to_hbm [thread:$0]  %s959_s27, 128, %s1626_s8, [#allocation15], %s1387_s12, %s1387_s12, %s1388_s13  }
 0xb29   :  { %s1334_s15 = scalar_lea.vmem %s950_s29, 32  ;;  %p1339_p8 = scmp.lt.s32.totalorder %s950_s29, %s950_s29 }
 0xb2a   :  { %p1335_p7 = scmp.ne.s32.totalorder %s950_s29, %s1334_s15  ;;  %p1340_p9 = scmp.lt.s32.totalorder %s1334_s15, %s1334_s15 }
 0xb2c   :  { %p1341_p10 = por %p1340_p9, %p1339_p8 }
 0xb2e   :  { %p1342_p11 = pnand %p1341_p10, %p1335_p7 }
 0xb30   :  { %1345 = shalt.err (!%p1342_p11)
}
 0xb31   :  { %952 = dma.vmem_to_hbm [thread:$0]  %s950_s29, 32, %s1625_s7, [#allocation4]   ;;  %v938_v8 = vpop.permute.xlu1 %937 }
 0xb32   :  { %941 = vst.msk [vmem:[#allocation16 + $0x6] sm:$0x3] %vm312_vm3, %v938_v8  ;;  %s1354_s17 = scalar_lea.vmem %s1595_s30, 128  ;;  %p1359_p13 = scmp.lt.s32.totalorder %s1595_s30, %s1595_s30 }
 0xb33   :  { %p1355_p12 = scmp.ne.s32.totalorder %s1595_s30, %s1354_s17  ;;  %p1360_p0 = scmp.lt.s32.totalorder %s1354_s17, %s1354_s17 }
 0xb35   :  { %p1361_p1 = por %p1360_p0, %p1359_p13 }
 0xb37   :  { %p1362_p2 = pnand %p1361_p1, %p1355_p12 }
 0xb39   :  { %1365 = shalt.err (!%p1362_p2)
}
 0xb3a   :  { %976 = dma.vmem_to_hbm [thread:$0]  %s1595_s30, 128, %s1627_s9, [#allocation15], %s1387_s12, %s1387_s12, %s1388_s13  }
 0xb3b   :  { %1382 = dma.done.wait [#allocation4], 32  }
 0xb3c   :  { %1383 = vsyncadd [#allocation4], 4294967264 }
 0xb3d   :  { %1384 = dma.done.wait [#allocation15], 256  }
 0xb3e   :  { %1385 = vsyncadd [#allocation15], 4294967040 }
 0xb3f   :  { %986 = vsyncpa [#allocation3], 1 }
 0xb40   :  { %987 = vsyncpa [#allocation6], 1 }
 0xb41   :  { %988 = vsyncpa [#allocation9], 1 }
 0xb42   :  { %989 = vsyncpa [#allocation12], 1 }
 0xb43   :  { %990 = vsyncpa [#allocation4], 1 }
 0xb44   :  { %991 = vsyncpa [#allocation15], 1 }

</bundles_post_ra>
